<compile_context>
chip_gen: v7x
topology: tpu7x:2x2x1
jax: 0.10.0
libtpu: 0.0.40
codegen_flags: <defaults>
</compile_context>

<pallas_src>
import numpy as np

import jax
import jax.numpy as jnp
from jax.experimental import pallas as pl
from jax.experimental.pallas import tpu as pltpu


_SUBLANE = 8    # f32 sublane pack
_LANE = 128     # lane width


def _round_up(x, m):
    return -(-x // m) * m


# ----------------------------------------------------------------------------
# Setup-time glue (plain numpy): pool / upsample matrices.
# ----------------------------------------------------------------------------
def adaptive_pool_matrix(in_size: int, out_size: int) -> np.ndarray:
    """P[i, j] = 1/len(window_i) if j in window_i else 0 (AdaptiveAvgPool2d)."""
    m = np.zeros((out_size, in_size), dtype=np.float32)
    for i in range(out_size):
        start = (i * in_size) // out_size
        end = -((-(i + 1) * in_size) // out_size)   # ceil((i+1)*in/out)
        m[i, start:end] = 1.0 / float(end - start)
    return m


def bilinear_matrix(out_size: int, in_size: int) -> np.ndarray:
    """U[h, i]: bilinear interpolation weights, align_corners=True."""
    m = np.zeros((out_size, in_size), dtype=np.float32)
    if in_size == 1 or out_size == 1:
        m[:, 0] = 1.0
        return m
    for h in range(out_size):
        src = h * (in_size - 1) / (out_size - 1)
        i0 = min(int(np.floor(src)), in_size - 1)
        i1 = min(i0 + 1, in_size - 1)
        frac = src - i0
        m[h, i0] += 1.0 - frac
        m[h, i1] += frac
    return m


# ----------------------------------------------------------------------------
# Pallas kernel: whole PSP module (all branches + identity) for Bt batches.
# ----------------------------------------------------------------------------
def _make_psp_kernel(Bt, C, Cout, branch_cols):
    nb = len(branch_cols)
    Ctot = C + nb * Cout

    def kernel(x_ref, pt_ref, w_ref, t_ref, ut_ref, o_ref):
        x = x_ref[...]                                          # (Bt*C, HW)

        # Adaptive average pool for all branches and all blocked batches in
        # one MXU call: (Bt*C, HW) @ (HW, NPT) -> (Bt*C, NPT).
        pooled = jnp.dot(x, pt_ref[...], preferred_element_type=jnp.float32)

        w_all = w_ref[...]                                      # (nb*Cout, C)
        t_all = t_ref[...]                                      # (nb*Cout, 1)

        ups = []
        for i, (off, width) in enumerate(branch_cols):
            w_i = w_all[i * Cout:(i + 1) * Cout, :]             # (Cout, C)
            t_i = t_all[i * Cout:(i + 1) * Cout, :]             # (Cout, 1)
            # 1x1 conv (+ folded bias/BN) + ReLU on this branch's own pooled
            # columns only -- no cross-branch (block-diagonal) waste.
            zs = []
            for b in range(Bt):                                 # short unrolled loop
                p_bi = pooled[b * C:(b + 1) * C, off:off + width]
                z_bi = jnp.dot(w_i, p_bi, preferred_element_type=jnp.float32)
                zs.append(jnp.maximum(z_bi + t_i, 0.0))
            z_i = zs[0] if Bt == 1 else jnp.concatenate(zs, axis=0)  # (Bt*Cout, width)
            # Bilinear upsample (align_corners=True); the zero rows of ut_cat
            # in padded columns make the relu(bias) values there inert.
            ut_i = ut_ref[off:off + width, :]                   # (width, HW)
            ups.append(jnp.dot(z_i, ut_i, preferred_element_type=jnp.float32))

        # Emit identity pass-through + branch outputs per blocked batch, with
        # sublane-aligned row slices (C and nb*Cout are multiples of 8).
        for b in range(Bt):
            o_ref[b * Ctot: b * Ctot + C, :] = (
                x[b * C:(b + 1) * C, :].astype(o_ref.dtype))
            rows = jnp.concatenate(
                [ups[i][b * Cout:(b + 1) * Cout, :] for i in range(nb)], axis=0)
            o_ref[b * Ctot + C:(b + 1) * Ctot, :] = rows.astype(o_ref.dtype)

    return kernel


def psp_module_forward(x, fused_params, branch_cols, branch_channels):
    """x: (B, C, H, W) NCHW -> (B, C + n_branch*Cout, H, W)."""
    pt_cat, w_all, t_all, ut_cat = fused_params
    B, C, H, W = x.shape
    HW = H * W
    nb = len(branch_cols)
    Cout = branch_channels
    Ctot = C + nb * Cout

    assert HW % _LANE == 0, "H*W must be a multiple of 128 (lane-dense layout)"
    assert C % _SUBLANE == 0 and (nb * Cout) % _SUBLANE == 0, (
        "channel counts must be sublane-aligned so output stores stay unmasked")

    # Block several batch elements per grid step so the pool / upsample
    # matmuls present a reasonable M to the MXU: largest divisor of B with
    # Bt*C <= 256 (MXU rows on v6e/v7x).
    cands = [d for d in range(1, B + 1) if B % d == 0 and d * C <= 256]
    Bt = max(cands) if cands else 1

    x2 = x.reshape(B * C, HW)

    out = pl.pallas_call(
        _make_psp_kernel(Bt, C, Cout, branch_cols),
        out_shape=jax.ShapeDtypeStruct((B * Ctot, HW), x.dtype),
        grid_spec=pltpu.PrefetchScalarGridSpec(
            num_scalar_prefetch=0,
            grid=(B // Bt,),
            in_specs=[
                pl.BlockSpec((Bt * C, HW), lambda g: (g, 0)),
                pl.BlockSpec(pt_cat.shape, lambda g: (0, 0)),
                pl.BlockSpec(w_all.shape, lambda g: (0, 0)),
                pl.BlockSpec(t_all.shape, lambda g: (0, 0)),
                pl.BlockSpec(ut_cat.shape, lambda g: (0, 0)),
            ],
            out_specs=pl.BlockSpec((Bt * Ctot, HW), lambda g: (g, 0)),
        ),
        compiler_params=pltpu.CompilerParams(
            dimension_semantics=("parallel",),
            vmem_limit_bytes=32 * 1024 * 1024),
    )(x2, pt_cat, w_all, t_all, ut_cat)

    return out.reshape(B, Ctot, H, W)


# ----------------------------------------------------------------------------
# Deterministic parameter construction + fusion/padding at setup time.
# ----------------------------------------------------------------------------
def make_psp_params(key, in_channels, H, W, bin_size_list):
    Cout = in_channels // 4
    eps = 1e-5
    HW = H * W
    nb = len(bin_size_list)

    sizes = [bs * bs for bs in bin_size_list]               # real pooled columns
    pads = [_round_up(s, _SUBLANE) for s in sizes]          # per-branch sublane pad
    offs = [0]
    for p in pads[:-1]:
        offs.append(offs[-1] + p)
    used = offs[-1] + pads[-1]
    npt = _round_up(used, _LANE)                            # pad concatenated axis once

    pt_cat = np.zeros((HW, npt), np.float32)
    ut_cat = np.zeros((npt, HW), np.float32)
    w_rows, t_rows, raw = [], [], []

    for i, bs in enumerate(bin_size_list):
        k = jax.random.fold_in(key, i)
        kw, kb, kg, kbeta, km, kv = jax.random.split(k, 6)
        w = np.asarray(jax.random.normal(kw, (Cout, in_channels), jnp.float32)) * 0.1
        bias = np.asarray(jax.random.normal(kb, (Cout,), jnp.float32)) * 0.05
        gamma = 1.0 + 0.1 * np.asarray(jax.random.normal(kg, (Cout,), jnp.float32))
        beta = 0.05 * np.asarray(jax.random.normal(kbeta, (Cout,), jnp.float32))
        run_mean = 0.05 * np.asarray(jax.random.normal(km, (Cout,), jnp.float32))
        run_var = 1.0 + 0.1 * np.asarray(
            jax.random.uniform(kv, (Cout,), jnp.float32))

        scale = gamma / np.sqrt(run_var + eps)               # BN eval-mode fold
        shift = beta - run_mean * scale

        ph = adaptive_pool_matrix(H, bs)                     # (bs, H)
        pw = adaptive_pool_matrix(W, bs)                     # (bs, W)
        uh = bilinear_matrix(H, bs)                          # (H, bs)
        uw = bilinear_matrix(W, bs)                          # (W, bs)
        raw.append((ph, pw, w, bias, scale, shift, uh, uw))

        P = np.kron(ph, pw)                                  # (bs*bs, HW)
        Ut = np.kron(uh, uw).T                               # (bs*bs, HW)
        off, s = offs[i], sizes[i]
        pt_cat[:, off:off + s] = P.T
        ut_cat[off:off + s, :] = Ut                          # padded rows stay zero

        w_rows.append(scale[:, None] * w)                    # conv weight, BN folded
        t_rows.append((bias * scale + shift)[:, None])

    # Guard: every padded/unused pooled column must map to a zero row of
    # ut_cat so relu(bias) garbage there never reaches the output.
    for i in range(nb):
        assert not ut_cat[offs[i] + sizes[i]: offs[i] + pads[i], :].any()
    assert not ut_cat[used:, :].any()

    fused = (
        jnp.asarray(pt_cat),                                 # (HW, npt)
        jnp.asarray(np.concatenate(w_rows, axis=0)),         # (nb*Cout, C)
        jnp.asarray(np.concatenate(t_rows, axis=0)),         # (nb*Cout, 1)
        jnp.asarray(ut_cat),                                 # (npt, HW)
    )
    branch_cols = list(zip(offs, pads))
    raw_j = [tuple(jnp.asarray(a) for a in p) for p in raw]
    return fused, branch_cols, Cout, raw_j


# ----------------------------------------------------------------------------
# Pure-JAX reference (un-fused, per-branch) for correctness check.
# ----------------------------------------------------------------------------
def psp_module_ref(x, raw_params):
    hp = jax.lax.Precision.HIGHEST
    outs = [x]
    for (ph, pw, w, b, s, t, uh, uw) in raw_params:
        pooled = jnp.einsum('ih,bchw,jw->bcij', ph, x, pw, precision=hp)
        z = jnp.einsum('kc,bcij->bkij', w, pooled, precision=hp)
        z = z + b.reshape(1, -1, 1, 1)
        z = z * s.reshape(1, -1, 1, 1) + t.reshape(1, -1, 1, 1)
        z = jnp.maximum(z, 0.0)
        up = jnp.einsum('hi,bkij,wj->bkhw', uh, z, uw, precision=hp)
        outs.append(up)
    return jnp.concatenate(outs, axis=1)


if __name__ == "__main__":
    B, C, H, W = 2, 8, 16, 16
    bin_size_list = [4, 6, 8, 10]

    key = jax.random.PRNGKey(0)
    kx, kp = jax.random.split(key)
    x = jax.random.normal(kx, (B, C, H, W), jnp.float32)
    fused_params, branch_cols, Cout, raw_params = make_psp_params(
        kp, C, H, W, bin_size_list)

    out = jax.block_until_ready(
        psp_module_forward(x, fused_params, branch_cols, Cout))
    ref = jax.block_until_ready(psp_module_ref(x, raw_params))

    assert out.shape == (B, C + len(bin_size_list) * (C // 4), H, W), out.shape
    out_np, ref_np = np.asarray(out), np.asarray(ref)
    # Identity pass-through is a pure copy -> must be bit exact.
    np.testing.assert_array_equal(out_np[:, :C], ref_np[:, :C])
    # Branch outputs: the reference runs its einsums at Precision.HIGHEST
    # while the kernel uses the MXU's default matmul precision, so allow a
    # small numerical slack.
    np.testing.assert_allclose(out_np, ref_np, rtol=5e-3, atol=5e-3)
    print("KERNEL_OK")
</pallas_src>

<mosaic_0001>
module attributes {stable_mosaic.version = 11 : i64} {
  func.func @kernel(%arg0: i32, %arg1: memref<16x256xf32, #tpu.memory_space<vmem>>, %arg2: memref<256x256xf32, #tpu.memory_space<vmem>>, %arg3: memref<8x8xf32, #tpu.memory_space<vmem>>, %arg4: memref<8x1xf32, #tpu.memory_space<vmem>>, %arg5: memref<256x256xf32, #tpu.memory_space<vmem>>, %arg6: memref<32x256xf32, #tpu.memory_space<vmem>>) attributes {dimension_semantics = [#tpu.dimension_semantics<parallel>], iteration_bounds = array<i64: 1>, scalar_prefetch = 0 : i64, scratch_operands = 0 : i64, tpu.core_type = #tpu.core_type<tc>, window_params = [{transform_indices = @transform_0, window_bounds = array<i64: 16, 256>}, {pipeline_mode = #tpu.pipeline_mode<synchronous>, transform_indices = @transform_1, window_bounds = array<i64: 256, 256>}, {pipeline_mode = #tpu.pipeline_mode<synchronous>, transform_indices = @transform_2, window_bounds = array<i64: 8, 8>}, {pipeline_mode = #tpu.pipeline_mode<synchronous>, transform_indices = @transform_3, window_bounds = array<i64: 8, 1>}, {pipeline_mode = #tpu.pipeline_mode<synchronous>, transform_indices = @transform_4, window_bounds = array<i64: 256, 256>}, {transform_indices = @transform_5, window_bounds = array<i64: 32, 256>}]} {
    %c0 = arith.constant 0 : index
    %c0_0 = arith.constant 0 : index
    %0 = vector.load %arg1[%c0, %c0_0] : memref<16x256xf32, #tpu.memory_space<vmem>>, vector<16x256xf32>
    %c0_1 = arith.constant 0 : index
    %c0_2 = arith.constant 0 : index
    %1 = vector.load %arg2[%c0_1, %c0_2] : memref<256x256xf32, #tpu.memory_space<vmem>>, vector<256x256xf32>
    %cst = arith.constant dense<0.000000e+00> : vector<16x256xf32>
    %2 = tpu.matmul %0, %1, %cst {dimension_numbers = #tpu.dot_dimension_numbers<[1], [0], [0], [1], [0, 0, 1, 1], [], []>} : vector<16x256xf32>, vector<256x256xf32>, vector<16x256xf32> -> vector<16x256xf32>
    %c0_3 = arith.constant 0 : index
    %c0_4 = arith.constant 0 : index
    %3 = vector.load %arg3[%c0_3, %c0_4] : memref<8x8xf32, #tpu.memory_space<vmem>>, vector<8x8xf32>
    %c0_5 = arith.constant 0 : index
    %c0_6 = arith.constant 0 : index
    %4 = vector.load %arg4[%c0_5, %c0_6] : memref<8x1xf32, #tpu.memory_space<vmem>>, vector<8x1xf32>
    %5 = vector.extract_strided_slice %3 {offsets = [0, 0], sizes = [2, 8], strides = [1, 1]} : vector<8x8xf32> to vector<2x8xf32>
    %6 = vector.extract_strided_slice %4 {offsets = [0, 0], sizes = [2, 1], strides = [1, 1]} : vector<8x1xf32> to vector<2x1xf32>
    %7 = vector.extract_strided_slice %2 {offsets = [0, 0], sizes = [8, 16], strides = [1, 1]} : vector<16x256xf32> to vector<8x16xf32>
    %cst_7 = arith.constant dense<0.000000e+00> : vector<2x16xf32>
    %8 = tpu.matmul %5, %7, %cst_7 {dimension_numbers = #tpu.dot_dimension_numbers<[1], [0], [0], [1], [0, 0, 1, 1], [], []>} : vector<2x8xf32>, vector<8x16xf32>, vector<2x16xf32> -> vector<2x16xf32>
    %9 = vector.broadcast %6 : vector<2x1xf32> to vector<2x16xf32>
    %10 = arith.addf %8, %9 : vector<2x16xf32>
    %cst_8 = arith.constant 0.000000e+00 : f32
    %11 = vector.broadcast %cst_8 : f32 to vector<2x16xf32>
    %12 = arith.maximumf %10, %11 : vector<2x16xf32>
    %13 = vector.extract_strided_slice %2 {offsets = [8, 0], sizes = [8, 16], strides = [1, 1]} : vector<16x256xf32> to vector<8x16xf32>
    %cst_9 = arith.constant dense<0.000000e+00> : vector<2x16xf32>
    %14 = tpu.matmul %5, %13, %cst_9 {dimension_numbers = #tpu.dot_dimension_numbers<[1], [0], [0], [1], [0, 0, 1, 1], [], []>} : vector<2x8xf32>, vector<8x16xf32>, vector<2x16xf32> -> vector<2x16xf32>
    %15 = vector.broadcast %6 : vector<2x1xf32> to vector<2x16xf32>
    %16 = arith.addf %14, %15 : vector<2x16xf32>
    %cst_10 = arith.constant 0.000000e+00 : f32
    %17 = vector.broadcast %cst_10 : f32 to vector<2x16xf32>
    %18 = arith.maximumf %16, %17 : vector<2x16xf32>
    %19 = tpu.concatenate %12, %18 in 0 : vector<2x16xf32>, vector<2x16xf32> -> vector<4x16xf32>
    %c0_11 = arith.constant 0 : index
    %c0_12 = arith.constant 0 : index
    %20 = vector.load %arg5[%c0_11, %c0_12] : memref<256x256xf32, #tpu.memory_space<vmem>>, vector<16x256xf32>
    %cst_13 = arith.constant dense<0.000000e+00> : vector<4x256xf32>
    %21 = tpu.matmul %19, %20, %cst_13 {dimension_numbers = #tpu.dot_dimension_numbers<[1], [0], [0], [1], [0, 0, 1, 1], [], []>} : vector<4x16xf32>, vector<16x256xf32>, vector<4x256xf32> -> vector<4x256xf32>
    %22 = vector.extract_strided_slice %3 {offsets = [2, 0], sizes = [2, 8], strides = [1, 1]} : vector<8x8xf32> to vector<2x8xf32>
    %23 = vector.extract_strided_slice %4 {offsets = [2, 0], sizes = [2, 1], strides = [1, 1]} : vector<8x1xf32> to vector<2x1xf32>
    %24 = vector.extract_strided_slice %2 {offsets = [0, 16], sizes = [8, 40], strides = [1, 1]} : vector<16x256xf32> to vector<8x40xf32>
    %cst_14 = arith.constant dense<0.000000e+00> : vector<2x40xf32>
    %25 = tpu.matmul %22, %24, %cst_14 {dimension_numbers = #tpu.dot_dimension_numbers<[1], [0], [0], [1], [0, 0, 1, 1], [], []>} : vector<2x8xf32>, vector<8x40xf32>, vector<2x40xf32> -> vector<2x40xf32>
    %26 = vector.broadcast %23 : vector<2x1xf32> to vector<2x40xf32>
    %27 = arith.addf %25, %26 : vector<2x40xf32>
    %cst_15 = arith.constant 0.000000e+00 : f32
    %28 = vector.broadcast %cst_15 : f32 to vector<2x40xf32>
    %29 = arith.maximumf %27, %28 : vector<2x40xf32>
    %30 = vector.extract_strided_slice %2 {offsets = [8, 16], sizes = [8, 40], strides = [1, 1]} : vector<16x256xf32> to vector<8x40xf32>
    %cst_16 = arith.constant dense<0.000000e+00> : vector<2x40xf32>
    %31 = tpu.matmul %22, %30, %cst_16 {dimension_numbers = #tpu.dot_dimension_numbers<[1], [0], [0], [1], [0, 0, 1, 1], [], []>} : vector<2x8xf32>, vector<8x40xf32>, vector<2x40xf32> -> vector<2x40xf32>
    %32 = vector.broadcast %23 : vector<2x1xf32> to vector<2x40xf32>
    %33 = arith.addf %31, %32 : vector<2x40xf32>
    %cst_17 = arith.constant 0.000000e+00 : f32
    %34 = vector.broadcast %cst_17 : f32 to vector<2x40xf32>
    %35 = arith.maximumf %33, %34 : vector<2x40xf32>
    %36 = tpu.concatenate %29, %35 in 0 : vector<2x40xf32>, vector<2x40xf32> -> vector<4x40xf32>
    %c16 = arith.constant 16 : index
    %c0_18 = arith.constant 0 : index
    %37 = vector.load %arg5[%c16, %c0_18] : memref<256x256xf32, #tpu.memory_space<vmem>>, vector<40x256xf32>
    %cst_19 = arith.constant dense<0.000000e+00> : vector<4x256xf32>
    %38 = tpu.matmul %36, %37, %cst_19 {dimension_numbers = #tpu.dot_dimension_numbers<[1], [0], [0], [1], [0, 0, 1, 1], [], []>} : vector<4x40xf32>, vector<40x256xf32>, vector<4x256xf32> -> vector<4x256xf32>
    %39 = vector.extract_strided_slice %3 {offsets = [4, 0], sizes = [2, 8], strides = [1, 1]} : vector<8x8xf32> to vector<2x8xf32>
    %40 = vector.extract_strided_slice %4 {offsets = [4, 0], sizes = [2, 1], strides = [1, 1]} : vector<8x1xf32> to vector<2x1xf32>
    %41 = vector.extract_strided_slice %2 {offsets = [0, 56], sizes = [8, 64], strides = [1, 1]} : vector<16x256xf32> to vector<8x64xf32>
    %cst_20 = arith.constant dense<0.000000e+00> : vector<2x64xf32>
    %42 = tpu.matmul %39, %41, %cst_20 {dimension_numbers = #tpu.dot_dimension_numbers<[1], [0], [0], [1], [0, 0, 1, 1], [], []>} : vector<2x8xf32>, vector<8x64xf32>, vector<2x64xf32> -> vector<2x64xf32>
    %43 = vector.broadcast %40 : vector<2x1xf32> to vector<2x64xf32>
    %44 = arith.addf %42, %43 : vector<2x64xf32>
    %cst_21 = arith.constant 0.000000e+00 : f32
    %45 = vector.broadcast %cst_21 : f32 to vector<2x64xf32>
    %46 = arith.maximumf %44, %45 : vector<2x64xf32>
    %47 = vector.extract_strided_slice %2 {offsets = [8, 56], sizes = [8, 64], strides = [1, 1]} : vector<16x256xf32> to vector<8x64xf32>
    %cst_22 = arith.constant dense<0.000000e+00> : vector<2x64xf32>
    %48 = tpu.matmul %39, %47, %cst_22 {dimension_numbers = #tpu.dot_dimension_numbers<[1], [0], [0], [1], [0, 0, 1, 1], [], []>} : vector<2x8xf32>, vector<8x64xf32>, vector<2x64xf32> -> vector<2x64xf32>
    %49 = vector.broadcast %40 : vector<2x1xf32> to vector<2x64xf32>
    %50 = arith.addf %48, %49 : vector<2x64xf32>
    %cst_23 = arith.constant 0.000000e+00 : f32
    %51 = vector.broadcast %cst_23 : f32 to vector<2x64xf32>
    %52 = arith.maximumf %50, %51 : vector<2x64xf32>
    %53 = tpu.concatenate %46, %52 in 0 : vector<2x64xf32>, vector<2x64xf32> -> vector<4x64xf32>
    %c56 = arith.constant 56 : index
    %c0_24 = arith.constant 0 : index
    %54 = vector.load %arg5[%c56, %c0_24] : memref<256x256xf32, #tpu.memory_space<vmem>>, vector<64x256xf32>
    %cst_25 = arith.constant dense<0.000000e+00> : vector<4x256xf32>
    %55 = tpu.matmul %53, %54, %cst_25 {dimension_numbers = #tpu.dot_dimension_numbers<[1], [0], [0], [1], [0, 0, 1, 1], [], []>} : vector<4x64xf32>, vector<64x256xf32>, vector<4x256xf32> -> vector<4x256xf32>
    %56 = vector.extract_strided_slice %3 {offsets = [6, 0], sizes = [2, 8], strides = [1, 1]} : vector<8x8xf32> to vector<2x8xf32>
    %57 = vector.extract_strided_slice %4 {offsets = [6, 0], sizes = [2, 1], strides = [1, 1]} : vector<8x1xf32> to vector<2x1xf32>
    %58 = vector.extract_strided_slice %2 {offsets = [0, 120], sizes = [8, 104], strides = [1, 1]} : vector<16x256xf32> to vector<8x104xf32>
    %cst_26 = arith.constant dense<0.000000e+00> : vector<2x104xf32>
    %59 = tpu.matmul %56, %58, %cst_26 {dimension_numbers = #tpu.dot_dimension_numbers<[1], [0], [0], [1], [0, 0, 1, 1], [], []>} : vector<2x8xf32>, vector<8x104xf32>, vector<2x104xf32> -> vector<2x104xf32>
    %60 = vector.broadcast %57 : vector<2x1xf32> to vector<2x104xf32>
    %61 = arith.addf %59, %60 : vector<2x104xf32>
    %cst_27 = arith.constant 0.000000e+00 : f32
    %62 = vector.broadcast %cst_27 : f32 to vector<2x104xf32>
    %63 = arith.maximumf %61, %62 : vector<2x104xf32>
    %64 = vector.extract_strided_slice %2 {offsets = [8, 120], sizes = [8, 104], strides = [1, 1]} : vector<16x256xf32> to vector<8x104xf32>
    %cst_28 = arith.constant dense<0.000000e+00> : vector<2x104xf32>
    %65 = tpu.matmul %56, %64, %cst_28 {dimension_numbers = #tpu.dot_dimension_numbers<[1], [0], [0], [1], [0, 0, 1, 1], [], []>} : vector<2x8xf32>, vector<8x104xf32>, vector<2x104xf32> -> vector<2x104xf32>
    %66 = vector.broadcast %57 : vector<2x1xf32> to vector<2x104xf32>
    %67 = arith.addf %65, %66 : vector<2x104xf32>
    %cst_29 = arith.constant 0.000000e+00 : f32
    %68 = vector.broadcast %cst_29 : f32 to vector<2x104xf32>
    %69 = arith.maximumf %67, %68 : vector<2x104xf32>
    %70 = tpu.concatenate %63, %69 in 0 : vector<2x104xf32>, vector<2x104xf32> -> vector<4x104xf32>
    %c120 = arith.constant 120 : index
    %c0_30 = arith.constant 0 : index
    %71 = vector.load %arg5[%c120, %c0_30] : memref<256x256xf32, #tpu.memory_space<vmem>>, vector<104x256xf32>
    %cst_31 = arith.constant dense<0.000000e+00> : vector<4x256xf32>
    %72 = tpu.matmul %70, %71, %cst_31 {dimension_numbers = #tpu.dot_dimension_numbers<[1], [0], [0], [1], [0, 0, 1, 1], [], []>} : vector<4x104xf32>, vector<104x256xf32>, vector<4x256xf32> -> vector<4x256xf32>
    %73 = vector.extract_strided_slice %0 {offsets = [0, 0], sizes = [8, 256], strides = [1, 1]} : vector<16x256xf32> to vector<8x256xf32>
    %c0_32 = arith.constant 0 : index
    %c0_33 = arith.constant 0 : index
    %74 = vector.load %arg6[%c0_32, %c0_33] : memref<32x256xf32, #tpu.memory_space<vmem>>, vector<8x256xf32>
    tpu.vector_store %arg6[%c0_32, %c0_33], %73 {strides = array<i32>} : memref<32x256xf32, #tpu.memory_space<vmem>>, vector<8x256xf32>,
    %75 = vector.extract_strided_slice %21 {offsets = [0, 0], sizes = [2, 256], strides = [1, 1]} : vector<4x256xf32> to vector<2x256xf32>
    %76 = vector.extract_strided_slice %38 {offsets = [0, 0], sizes = [2, 256], strides = [1, 1]} : vector<4x256xf32> to vector<2x256xf32>
    %77 = vector.extract_strided_slice %55 {offsets = [0, 0], sizes = [2, 256], strides = [1, 1]} : vector<4x256xf32> to vector<2x256xf32>
    %78 = vector.extract_strided_slice %72 {offsets = [0, 0], sizes = [2, 256], strides = [1, 1]} : vector<4x256xf32> to vector<2x256xf32>
    %79 = tpu.concatenate %75, %76, %77, %78 in 0 : vector<2x256xf32>, vector<2x256xf32>, vector<2x256xf32>, vector<2x256xf32> -> vector<8x256xf32>
    %c8 = arith.constant 8 : index
    %c0_34 = arith.constant 0 : index
    %80 = vector.load %arg6[%c8, %c0_34] : memref<32x256xf32, #tpu.memory_space<vmem>>, vector<8x256xf32>
    tpu.vector_store %arg6[%c8, %c0_34], %79 {strides = array<i32>} : memref<32x256xf32, #tpu.memory_space<vmem>>, vector<8x256xf32>,
    %81 = vector.extract_strided_slice %0 {offsets = [8, 0], sizes = [8, 256], strides = [1, 1]} : vector<16x256xf32> to vector<8x256xf32>
    %c16_35 = arith.constant 16 : index
    %c0_36 = arith.constant 0 : index
    %82 = vector.load %arg6[%c16_35, %c0_36] : memref<32x256xf32, #tpu.memory_space<vmem>>, vector<8x256xf32>
    tpu.vector_store %arg6[%c16_35, %c0_36], %81 {strides = array<i32>} : memref<32x256xf32, #tpu.memory_space<vmem>>, vector<8x256xf32>,
    %83 = vector.extract_strided_slice %21 {offsets = [2, 0], sizes = [2, 256], strides = [1, 1]} : vector<4x256xf32> to vector<2x256xf32>
    %84 = vector.extract_strided_slice %38 {offsets = [2, 0], sizes = [2, 256], strides = [1, 1]} : vector<4x256xf32> to vector<2x256xf32>
    %85 = vector.extract_strided_slice %55 {offsets = [2, 0], sizes = [2, 256], strides = [1, 1]} : vector<4x256xf32> to vector<2x256xf32>
    %86 = vector.extract_strided_slice %72 {offsets = [2, 0], sizes = [2, 256], strides = [1, 1]} : vector<4x256xf32> to vector<2x256xf32>
    %87 = tpu.concatenate %83, %84, %85, %86 in 0 : vector<2x256xf32>, vector<2x256xf32>, vector<2x256xf32>, vector<2x256xf32> -> vector<8x256xf32>
    %c24 = arith.constant 24 : index
    %c0_37 = arith.constant 0 : index
    %88 = vector.load %arg6[%c24, %c0_37] : memref<32x256xf32, #tpu.memory_space<vmem>>, vector<8x256xf32>
    tpu.vector_store %arg6[%c24, %c0_37], %87 {strides = array<i32>} : memref<32x256xf32, #tpu.memory_space<vmem>>, vector<8x256xf32>,
    return
  }
  func.func @transform_0(%arg0: i32) -> (i32, i32) {
    %c0_i32 = arith.constant 0 : i32
    %c0_i32_0 = arith.constant 0 : i32
    return %arg0, %c0_i32 : i32, i32
  }
  func.func @transform_1(%arg0: i32) -> (i32, i32) {
    %c0_i32 = arith.constant 0 : i32
    %c0_i32_0 = arith.constant 0 : i32
    %c0_i32_1 = arith.constant 0 : i32
    return %c0_i32, %c0_i32_0 : i32, i32
  }
  func.func @transform_2(%arg0: i32) -> (i32, i32) {
    %c0_i32 = arith.constant 0 : i32
    %c0_i32_0 = arith.constant 0 : i32
    %c0_i32_1 = arith.constant 0 : i32
    return %c0_i32, %c0_i32_0 : i32, i32
  }
  func.func @transform_3(%arg0: i32) -> (i32, i32) {
    %c0_i32 = arith.constant 0 : i32
    %c0_i32_0 = arith.constant 0 : i32
    %c0_i32_1 = arith.constant 0 : i32
    return %c0_i32, %c0_i32_0 : i32, i32
  }
  func.func @transform_4(%arg0: i32) -> (i32, i32) {
    %c0_i32 = arith.constant 0 : i32
    %c0_i32_0 = arith.constant 0 : i32
    %c0_i32_1 = arith.constant 0 : i32
    return %c0_i32, %c0_i32_0 : i32, i32
  }
  func.func @transform_5(%arg0: i32) -> (i32, i32) {
    %c0_i32 = arith.constant 0 : i32
    %c0_i32_0 = arith.constant 0 : i32
    return %arg0, %c0_i32 : i32, i32
  }
}

</mosaic_0001>

<bundles_post_ra>
// kernel: tpu_custom_call.1
= control target key start
LH: loop header
LB: loop body
LE: loop exit
PB: predicated region body
PF: predicated region fallthrough
CT: control target
= control target key end

     0   :  { %10 = vsyncpa [#allocation3], 0  ;;  %s1760_s0 = inlined_call_operand.hbm [shape: f32[16,256], index: 0, kind: input, shape index: {}]   ;;  %s1761_s1 = inlined_call_operand.hbm [shape: f32[256,256], index: 1, kind: input, shape index: {}]   ;;  %s1762_s2 = inlined_call_operand.vmem [shape: f32[8,8], index: 2, kind: input, shape index: {}]   ;;  %s1763_s3 = inlined_call_operand.vmem [shape: f32[8,1], index: 3, kind: input, shape index: {}]   ;;  %s1764_s4 = inlined_call_operand.hbm [shape: f32[256,256], index: 4, kind: input, shape index: {}]   ;;  %s1765_s5 = inlined_call_operand.hbm [shape: f32[32,256], index: 5, kind: output, shape index: {}]  }
   0x1   :  { %11 = vsyncpa [#allocation6], 0 }
   0x2   :  { %12 = vsyncpa [#allocation4], 0  ;;  %s1565_s18 = smov [#allocation5]   ;;  %s1566_s20 = smov [#allocation2]  }
   0x3   :  { %s30_s19 = sshll.u32 %s1565_s18, 4  ;;  %s18_s21 = sshll.u32 %s1566_s20, 4  ;;  %s31_s19 = int_to_ptr.vmem [resolvable:$true] %s30_s19  ;;  %s1607_s21 = int_to_ptr.vmem [resolvable:$true] %s18_s21 }
   0x4   :  { %s1471_s24 = scalar_lea.hbm %s1761_s1, 8192 }
   0x5   :  { %p1472_p0 = scmp.ne.s32.totalorder %s1761_s1, %s1471_s24  ;;  %p1475_p1 = scmp.lt.u32.totalorder %s1471_s24, %s1761_s1 }
   0x7   :  { %p1477_p2 = pnand %p1475_p1, %p1472_p0 }
   0x9   :  { %1480 = shalt.err (!%p1477_p2)
}
   0xa   :  { %s1481_s29 = scalar_lea.vmem %s31_s19, 8192  ;;  %p1486_p4 = scmp.lt.s32.totalorder %s31_s19, %s31_s19 }
   0xb   :  { %p1482_p3 = scmp.ne.s32.totalorder %s31_s19, %s1481_s29  ;;  %p1487_p5 = scmp.lt.s32.totalorder %s1481_s29, %s1481_s29 }
   0xd   :  { %p1488_p6 = por %p1487_p5, %p1486_p4 }
   0xf   :  { %p1489_p7 = pnand %p1488_p6, %p1482_p3 }
  0x11   :  { %1492 = shalt.err (!%p1489_p7)
}
  0x12   :  { %s1567_s30 = smov 256   ;;  %s1568_s6 = smov 16  }
  0x13   :  { %36 = dma.hbm_to_vmem [thread:$0]  %s1761_s1, 8192, %s31_s19, [#allocation6], %s1567_s30, %s1567_s30, %s1568_s6  }
  0x14   :  { %s1493_s11 = scalar_lea.hbm %s1760_s0, 512 }
  0x15   :  { %p1494_p8 = scmp.ne.s32.totalorder %s1760_s0, %s1493_s11  ;;  %p1497_p9 = scmp.lt.u32.totalorder %s1493_s11, %s1760_s0 }
  0x17   :  { %p1499_p10 = pnand %p1497_p9, %p1494_p8 }
  0x19   :  { %1502 = shalt.err (!%p1499_p10)
}
  0x1a   :  { %s1503_s16 = scalar_lea.vmem %s1607_s21, 512  ;;  %p1508_p12 = scmp.lt.s32.totalorder %s1607_s21, %s1607_s21 }
  0x1b   :  { %p1504_p11 = scmp.ne.s32.totalorder %s1607_s21, %s1503_s16  ;;  %p1509_p13 = scmp.lt.s32.totalorder %s1503_s16, %s1503_s16 }
  0x1d   :  { %p1510_p0 = por %p1509_p13, %p1508_p12 }
  0x1f   :  { %p1511_p1 = pnand %p1510_p0, %p1504_p11 }
  0x21   :  { %1514 = shalt.err (!%p1511_p1)
}
  0x22   :  { %24 = dma.hbm_to_vmem [thread:$0]  %s1760_s0, 512, %s1607_s21, [#allocation3], %s1567_s30, %s1567_s30, %s1568_s6  }
  0x23   :  { %s1569_s18 = smov [#allocation7]   ;;  %s1515_s23 = scalar_lea.hbm %s1764_s4, 8192 }
  0x24   :  { %s46_s19 = sshll.u32 %s1569_s18, 4  ;;  %p1516_p2 = scmp.ne.s32.totalorder %s1764_s4, %s1515_s23  ;;  %s47_s19 = int_to_ptr.vmem [resolvable:$true] %s46_s19 }
  0x25   :  { %p1519_p3 = scmp.lt.u32.totalorder %s1515_s23, %s1764_s4 }
  0x27   :  { %p1521_p4 = pnand %p1519_p3, %p1516_p2 }
  0x29   :  { %1524 = shalt.err (!%p1521_p4)
}
  0x2a   :  { %s1525_s28 = scalar_lea.vmem %s47_s19, 8192  ;;  %p1530_p6 = scmp.lt.s32.totalorder %s47_s19, %s47_s19 }
  0x2b   :  { %p1526_p5 = scmp.ne.s32.totalorder %s47_s19, %s1525_s28  ;;  %p1531_p7 = scmp.lt.s32.totalorder %s1525_s28, %s1525_s28 }
  0x2d   :  { %p1532_p8 = por %p1531_p7, %p1530_p6 }
  0x2f   :  { %p1533_p9 = pnand %p1532_p8, %p1526_p5 }
  0x31   :  { %1536 = shalt.err (!%p1533_p9)
}
  0x32   :  { %52 = dma.hbm_to_vmem [thread:$0]  %s1764_s4, 8192, %s47_s19, [#allocation6], %s1567_s30, %s1567_s30, %s1568_s6  }
  0x33   :  { %1559 = dma.done.wait [#allocation3], 512  }
  0x34   :  { %1560 = vsyncadd [#allocation3], 4294966784 }
  0x35   :  { %1561 = dma.done.wait [#allocation6], 16384  }
  0x36   :  { %1562 = vsyncadd [#allocation6], 4294950912  ;;  %v1570_v0 = vmov 0   ;;  %v67_v1 = vld [vmem:[#allocation5 + $0x8] sm:$0xff]  ;;  %v69_v2 = vld [vmem:[#allocation5 + $0x18] sm:$0xff]  ;;  %vm1572_vm0 = vmmov 0  }
  0x37   :  { %1470 = vset.pattern.permute.xlu0 %v1570_v0  ;;  %v66_v3 = vld [vmem:[#allocation5] sm:$0xff]  ;;  %v1342_v4 = vpack.c.bf16 %v69_v2, %v67_v1  ;;  %v68_v5 = vld [vmem:[#allocation5 + $0x10] sm:$0xff]  ;;  %v71_v6 = vld [vmem:[#allocation5 + $0x28] sm:$0xff]  ;;  %vm214_vm1 = vcmask 64512   ;;  %s1573_s8 = smov 112   ;;  %s1574_s9 = smov 72  }
  0x38   :  { %v73_v7 = vld [vmem:[#allocation5 + $0x38] sm:$0xff]  ;;  %v1344_v8 = vpack.c.bf16 %v68_v5, %v66_v3  ;;  %v70_v10 = vld [vmem:[#allocation5 + $0x20] sm:$0xff]  ;;  %v72_v11 = vld [vmem:[#allocation5 + $0x30] sm:$0xff]  ;;  %vm363_vm2 = vcmask 1041408   ;;  %vm369_vm3 = vcmask 130048   ;;  %vm613_vm4 = vcmask 326656  }
  0x39   :  { %v1346_v9 = vpack.c.bf16 %v73_v7, %v71_v6  ;;  %v75_v12 = vld [vmem:[#allocation5 + $0x48] sm:$0xff]  ;;  %1343 = vmatprep.subr.bf16.mxu0 %v1342_v4  ;;  %v77_v13 = vld [vmem:[#allocation5 + $0x58] sm:$0xff]  ;;  %v1348_v14 = vpack.c.bf16 %v72_v11, %v70_v10  ;;  %v74_v16 = vld [vmem:[#allocation5 + $0x40] sm:$0xff]  ;;  %vm861_vm5 = vcmask 523264   ;;  %vm1224_vm6 = vcmask 1043456   ;;  %s1576_s10 = smov [#allocation8]  }
  0x3a   :  { %1345 = vmatpush1.bf16.msra.mxu0 %v1344_v8  ;;  %v1350_v15 = vpack.c.bf16 %v77_v13, %v75_v12  ;;  %v76_v17 = vld [vmem:[#allocation5 + $0x50] sm:$0xff]  ;;  %v79_v18 = vld [vmem:[#allocation5 + $0x68] sm:$0xff]  ;;  %v81_v19 = vld [vmem:[#allocation5 + $0x78] sm:$0xff]  ;;  %vm1127_vm7 = vcmask 850944   ;;  %vm1227_vm8 = vcmask 1045504   ;;  %s1261_s11 = sshll.u32 %s1576_s10, 4  ;;  %s1262_s11 = int_to_ptr.vmem [resolvable:$true] %s1261_s11 }
  0x3b   :  { %1347 = vmatprep.subr.bf16.mxu0 %v1346_v9  ;;  %v1352_v20 = vpack.c.bf16 %v76_v17, %v74_v16  ;;  %v1354_v21 = vpack.c.bf16 %v81_v19, %v79_v18  ;;  %v78_v22 = vld [vmem:[#allocation5 + $0x60] sm:$0xff]  ;;  %v80_v23 = vld [vmem:[#allocation5 + $0x70] sm:$0xff]  ;;  %v83_v24 = vld [vmem:[#allocation5 + $0x88] sm:$0xff]  ;;  %s1537_s12 = scalar_lea.vmem %s1262_s11, 1024  ;;  %p1542_p11 = scmp.lt.s32.totalorder %s1262_s11, %s1262_s11 }
  0x3c   :  { %v85_v25 = vld [vmem:[#allocation5 + $0x98] sm:$0xff]  ;;  %v1356_v26 = vpack.c.bf16 %v80_v23, %v78_v22  ;;  %v82_v28 = vld [vmem:[#allocation5 + $0x80] sm:$0xff]  ;;  %v84_v29 = vld [vmem:[#allocation5 + $0x90] sm:$0xff]  ;;  %p1538_p10 = scmp.ne.s32.totalorder %s1262_s11, %s1537_s12  ;;  %p1543_p12 = scmp.lt.s32.totalorder %s1537_s12, %s1537_s12 }
  0x3d   :  { %v1358_v27 = vpack.c.bf16 %v85_v25, %v83_v24  ;;  %v87_v30 = vld [vmem:[#allocation5 + $0xa8] sm:$0xff]  ;;  %v89_v31 = vld [vmem:[#allocation5 + $0xb8] sm:$0xff]  ;;  %v1360_v32 = vpack.c.bf16 %v84_v29, %v82_v28  ;;  %v86_v34 = vld [vmem:[#allocation5 + $0xa0] sm:$0xff] }
  0x3e   :  { %1349 = vmatpush1.bf16.msra.mxu0 %v1348_v14  ;;  %v1362_v33 = vpack.c.bf16 %v89_v31, %v87_v30  ;;  %v88_v35 = vld [vmem:[#allocation5 + $0xb0] sm:$0xff]  ;;  %v91_v36 = vld [vmem:[#allocation5 + $0xc8] sm:$0xff]  ;;  %v93_v37 = vld [vmem:[#allocation5 + $0xd8] sm:$0xff]  ;;  %p1544_p13 = por %p1543_p12, %p1542_p11 }
  0x3f   :  { %1351 = vmatprep.subr.bf16.mxu0 %v1350_v15  ;;  %v1364_v38 = vpack.c.bf16 %v88_v35, %v86_v34  ;;  %v90_v39 = vld [vmem:[#allocation5 + $0xc0] sm:$0xff]  ;;  %v92_v40 = vld [vmem:[#allocation5 + $0xd0] sm:$0xff]  ;;  %v95_v41 = vld [vmem:[#allocation5 + $0xe8] sm:$0xff]  ;;  %v1366_v42 = vpack.c.bf16 %v93_v37, %v91_v36 }
  0x40   :  { %v97_v43 = vld [vmem:[#allocation5 + $0xf8] sm:$0xff]  ;;  %v63_v44 = vld [vmem:[#allocation2 + $0x8] sm:$0xff]  ;;  %v1659_v45 = vld [vmem:[#allocation2] sm:$0xff]  ;;  %v1368_v49 = vpack.c.bf16 %v92_v40, %v90_v39  ;;  %p1545_p0 = pnand %p1544_p13, %p1538_p10 }
  0x41   :  { %194 = vmatprep.mubr.f32.mxu0 %v63_v44  ;;  %1203 = vst [vmem:[#allocation8 + $0x8] sm:$0xff] %v63_v44  ;;  %1202 = vst [vmem:[#allocation8] sm:$0xff] %v1659_v45  ;;  %v1662_v46 = vld [vmem:[#allocation2 + $0x18] sm:$0xff]  ;;  %v1664_v47 = vld [vmem:[#allocation2 + $0x10] sm:$0xff]  ;;  %v1370_v50 = vpack.c.bf16 %v97_v43, %v95_v41 }
  0x42   :  { %1353 = vmatpush1.bf16.msra.mxu0 %v1352_v20  ;;  %v208_v48 = vld [vmem:[%s1763_s3] sm:$0xff]  ;;  %1233 = vst [vmem:[#allocation8 + $0x28] sm:$0xff] %v1662_v46  ;;  %1232 = vst [vmem:[#allocation8 + $0x20] sm:$0xff] %v1664_v47  ;;  %v96_v52 = vld [vmem:[#allocation5 + $0xf0] sm:$0xff] }
  0x43   :  { %1355 = vmatprep.subr.bf16.mxu0 %v1354_v21  ;;  %211 = vperm.xlu0 %1470, %v208_v48   ;;  %v94_v51 = vld [vmem:[#allocation5 + $0xe0] sm:$0xff]  ;;  %v99_v53 = vld [vmem:[#allocation5 + $0x108] sm:$0xff]  ;;  %v101_v54 = vld [vmem:[#allocation5 + $0x118] sm:$0xff] }
  0x44   :  { %v1372_v55 = vpack.c.bf16 %v96_v52, %v94_v51  ;;  %v1374_v56 = vpack.c.bf16 %v101_v54, %v99_v53  ;;  %v98_v57 = vld [vmem:[#allocation5 + $0x100] sm:$0xff]  ;;  %v100_v58 = vld [vmem:[#allocation5 + $0x110] sm:$0xff]  ;;  %v103_v59 = vld [vmem:[#allocation5 + $0x128] sm:$0xff] }
  0x45   :  { %v105_v60 = vld [vmem:[#allocation5 + $0x138] sm:$0xff]  ;;  %v1376_v61 = vpack.c.bf16 %v100_v58, %v98_v57  ;;  %v102_v63 = vld [vmem:[#allocation5 + $0x120] sm:$0xff]  ;;  %v104_v0 = vld [vmem:[#allocation5 + $0x130] sm:$0xff] }
  0x46   :  { %1357 = vmatpush1.bf16.msra.mxu0 %v1356_v26  ;;  %v1378_v62 = vpack.c.bf16 %v105_v60, %v103_v59  ;;  %v107_v1 = vld [vmem:[#allocation5 + $0x148] sm:$0xff]  ;;  %v109_v2 = vld [vmem:[#allocation5 + $0x158] sm:$0xff]  ;;  %v1380_v3 = vpack.c.bf16 %v104_v0, %v102_v63  ;;  %v106_v5 = vld [vmem:[#allocation5 + $0x140] sm:$0xff] }
  0x47   :  { %1359 = vmatprep.subr.bf16.mxu0 %v1358_v27  ;;  %v1382_v4 = vpack.c.bf16 %v109_v2, %v107_v1  ;;  %v108_v6 = vld [vmem:[#allocation5 + $0x150] sm:$0xff]  ;;  %v111_v7 = vld [vmem:[#allocation5 + $0x168] sm:$0xff]  ;;  %v113_v8 = vld [vmem:[#allocation5 + $0x178] sm:$0xff] }
  0x48   :  { %v1384_v9 = vpack.c.bf16 %v108_v6, %v106_v5  ;;  %v1386_v10 = vpack.c.bf16 %v113_v8, %v111_v7  ;;  %v110_v11 = vld [vmem:[#allocation5 + $0x160] sm:$0xff]  ;;  %v112_v12 = vld [vmem:[#allocation5 + $0x170] sm:$0xff]  ;;  %v115_v13 = vld [vmem:[#allocation5 + $0x188] sm:$0xff] }
  0x49   :  { %v117_v14 = vld [vmem:[#allocation5 + $0x198] sm:$0xff]  ;;  %v1388_v15 = vpack.c.bf16 %v112_v12, %v110_v11  ;;  %v114_v17 = vld [vmem:[#allocation5 + $0x180] sm:$0xff]  ;;  %v116_v18 = vld [vmem:[#allocation5 + $0x190] sm:$0xff] }
  0x4a   :  { %1361 = vmatpush1.bf16.msra.mxu0 %v1360_v32  ;;  %v1390_v16 = vpack.c.bf16 %v117_v14, %v115_v13  ;;  %v119_v19 = vld [vmem:[#allocation5 + $0x1a8] sm:$0xff]  ;;  %v121_v20 = vld [vmem:[#allocation5 + $0x1b8] sm:$0xff]  ;;  %v1392_v21 = vpack.c.bf16 %v116_v18, %v114_v17  ;;  %v118_v23 = vld [vmem:[#allocation5 + $0x1a0] sm:$0xff] }
  0x4b   :  { %1363 = vmatprep.subr.bf16.mxu0 %v1362_v33  ;;  %v1394_v22 = vpack.c.bf16 %v121_v20, %v119_v19  ;;  %v120_v24 = vld [vmem:[#allocation5 + $0x1b0] sm:$0xff]  ;;  %v123_v25 = vld [vmem:[#allocation5 + $0x1c8] sm:$0xff]  ;;  %v125_v26 = vld [vmem:[#allocation5 + $0x1d8] sm:$0xff] }
  0x4c   :  { %v1396_v27 = vpack.c.bf16 %v120_v24, %v118_v23  ;;  %v1398_v28 = vpack.c.bf16 %v125_v26, %v123_v25  ;;  %v122_v29 = vld [vmem:[#allocation5 + $0x1c0] sm:$0xff]  ;;  %v124_v30 = vld [vmem:[#allocation5 + $0x1d0] sm:$0xff]  ;;  %v127_v31 = vld [vmem:[#allocation5 + $0x1e8] sm:$0xff] }
  0x4d   :  { %v129_v32 = vld [vmem:[#allocation5 + $0x1f8] sm:$0xff]  ;;  %v1400_v33 = vpack.c.bf16 %v124_v30, %v122_v29  ;;  %v126_v35 = vld [vmem:[#allocation5 + $0x1e0] sm:$0xff]  ;;  %v128_v36 = vld [vmem:[#allocation5 + $0x1f0] sm:$0xff] }
  0x4e   :  { %1365 = vmatpush1.bf16.msra.mxu0 %v1364_v38  ;;  %v1402_v34 = vpack.c.bf16 %v129_v32, %v127_v31  ;;  %v1404_v37 = vpack.c.bf16 %v128_v36, %v126_v35  ;;  %v1571_v38 = vmov 0.0   ;;  %v1681_v39 = vld [vmem:[%s1762_s2] sm:$0xff]  ;;  %s1575_s2 = smov 8   ;;  %v366_v44 = vld [vmem:[#allocation7 + $0x8] sm:$0xff]  ;;  %v367_v48 = vld [vmem:[#allocation7 + $0x10] sm:$0xff] }
  0x4f   :  { %1367 = vmatprep.subr.bf16.mxu0 %v1366_v42  ;;  %1302 = vmatprep.subr.mxu1 %v1571_v38  ;;  %v688_v1 = vrot.slane %v1681_v39, 4  ;;  %v603_v6 = vld [vmem:[#allocation7 + $0x20] sm:$0xff]  ;;  %v605_v7 = vld [vmem:[#allocation7 + $0x30] sm:$0xff]  ;;  %v846_v8 = vld [vmem:[#allocation7 + $0x78] sm:$0xff] }
  0x50   :  { %1304 = vmatprep.mubr.msk.f32.mxu1 %vm1572_vm0, %v1571_v38  ;;  %v845_v11 = vld [vmem:[#allocation7 + $0x70] sm:$0xff]  ;;  %v847_v12 = vld [vmem:[#allocation7 + $0x80] sm:$0xff]  ;;  %v850_v20 = vld [vmem:[#allocation7 + $0x98] sm:$0xff] }
  0x51   :  { %v1420_v14 = vpack.c.bf16 %v847_v12, %v845_v11  ;;  %v607_v18 = vld [vmem:[#allocation7 + $0x40] sm:$0xff]  ;;  %v609_v19 = vld [vmem:[#allocation7 + $0x50] sm:$0xff]  ;;  %v612_v29 = vld [vmem:[#allocation7 + $0x68] sm:$0xff] }
  0x52   :  { %1369 = vmatpush1.bf16.msra.mxu0 %v1368_v49  ;;  %v849_v23 = vld [vmem:[#allocation7 + $0x90] sm:$0xff]  ;;  %v851_v24 = vld [vmem:[#allocation7 + $0xa0] sm:$0xff]  ;;  %v858_v35 = vld [vmem:[#allocation7 + $0xd8] sm:$0xff] }
  0x53   :  { %1371 = vmatprep.subr.bf16.mxu0 %v1370_v50  ;;  %v1424_v26 = vpack.c.bf16 %v851_v24, %v849_v23  ;;  %v853_v31 = vld [vmem:[#allocation7 + $0xb0] sm:$0xff]  ;;  %v855_v32 = vld [vmem:[#allocation7 + $0xc0] sm:$0xff]  ;;  %v860_v36 = vld [vmem:[#allocation7 + $0xe8] sm:$0xff] }
  0x54   :  { %v1101_v12 = vld [vmem:[#allocation7 + $0xf0] sm:$0xff]  ;;  %v1112_v23 = vld [vmem:[#allocation7 + $0x148] sm:$0xff] }
  0x55   :  { %v1109_v24 = vld [vmem:[#allocation7 + $0x130] sm:$0xff] }
  0x56   :  { %1373 = vmatpush1.bf16.msra.mxu0 %v1372_v55 }
  0x57   :  { %1375 = vmatprep.subr.bf16.mxu0 %v1374_v56 }
  0x5a   :  { %1377 = vmatpush1.bf16.msra.mxu0 %v1376_v61 }
  0x5b   :  { %1379 = vmatprep.subr.bf16.mxu0 %v1378_v62  ;;  %v444_v62 = vrot.slane %v1681_v39, 2 }
  0x5e   :  { %1381 = vmatpush1.bf16.msra.mxu0 %v1380_v3  ;;  %v604_v3 = vld [vmem:[#allocation7 + $0x28] sm:$0xff] }
  0x5f   :  { %1383 = vmatprep.subr.bf16.mxu0 %v1382_v4  ;;  %v606_v4 = vld [vmem:[#allocation7 + $0x38] sm:$0xff] }
  0x60   :  { %v1410_v5 = vpack.c.bf16 %v606_v4, %v604_v3 }
  0x62   :  { %1385 = vmatpush1.bf16.msra.mxu0 %v1384_v9  ;;  %v1412_v9 = vpack.c.bf16 %v605_v7, %v603_v6  ;;  %v1102_v6 = vld [vmem:[#allocation7 + $0xf8] sm:$0xff]  ;;  %v1104_v7 = vld [vmem:[#allocation7 + $0x108] sm:$0xff] }
  0x63   :  { %1387 = vmatprep.subr.bf16.mxu0 %v1386_v10  ;;  %v848_v10 = vld [vmem:[#allocation7 + $0x88] sm:$0xff]  ;;  %v1434_v11 = vpack.c.bf16 %v1104_v7, %v1102_v6 }
  0x64   :  { %v1418_v13 = vpack.c.bf16 %v848_v10, %v846_v8 }
  0x66   :  { %1389 = vmatpush1.bf16.msra.mxu0 %v1388_v15  ;;  %v608_v15 = vld [vmem:[#allocation7 + $0x48] sm:$0xff] }
  0x67   :  { %1391 = vmatprep.subr.bf16.mxu0 %v1390_v16  ;;  %v610_v16 = vld [vmem:[#allocation7 + $0x58] sm:$0xff] }
  0x68   :  { %v1414_v17 = vpack.c.bf16 %v610_v16, %v608_v15  ;;  %v1106_v16 = vld [vmem:[#allocation7 + $0x118] sm:$0xff] }
  0x6a   :  { %1393 = vmatpush1.bf16.msra.mxu0 %v1392_v21  ;;  %v1416_v21 = vpack.c.bf16 %v609_v19, %v607_v18  ;;  %v1105_v19 = vld [vmem:[#allocation7 + $0x110] sm:$0xff] }
  0x6b   :  { %1395 = vmatprep.subr.bf16.mxu0 %v1394_v22  ;;  %v852_v22 = vld [vmem:[#allocation7 + $0xa8] sm:$0xff] }
  0x6c   :  { %v1422_v25 = vpack.c.bf16 %v852_v22, %v850_v20  ;;  %v1107_v20 = vld [vmem:[#allocation7 + $0x120] sm:$0xff]  ;;  %v1110_v22 = vld [vmem:[#allocation7 + $0x138] sm:$0xff] }
  0x6e   :  { %1397 = vmatpush1.bf16.msra.mxu0 %v1396_v27  ;;  %v854_v27 = vld [vmem:[#allocation7 + $0xb8] sm:$0xff] }
  0x6f   :  { %1399 = vmatprep.subr.bf16.mxu0 %v1398_v28  ;;  %v856_v28 = vld [vmem:[#allocation7 + $0xc8] sm:$0xff] }
  0x70   :  { %v1426_v30 = vpack.c.bf16 %v856_v28, %v854_v27  ;;  %v1114_v28 = vld [vmem:[#allocation7 + $0x158] sm:$0xff] }
  0x72   :  { %1401 = vmatpush1.bf16.msra.mxu0 %v1400_v33  ;;  %v611_v33 = vld [vmem:[#allocation7 + $0x60] sm:$0xff] }
  0x73   :  { %1403 = vmatprep.subr.bf16.mxu0 %v1402_v34  ;;  %v1428_v34 = vpack.c.bf16 %v855_v32, %v853_v31  ;;  %v1115_v31 = vld [vmem:[#allocation7 + $0x160] sm:$0xff] }
  0x76   :  { %1405 = vmatpush1.bf16.msra.mxu0 %v1404_v37  ;;  %v1430_v37 = vpack.c.bf16 %v860_v36, %v858_v35  ;;  %v1117_v36 = vld [vmem:[#allocation7 + $0x170] sm:$0xff] }
  0x77   :  { %1411 = vmatprep.subr.bf16.mxu0 %v1410_v5 }
  0x79   :  { %195 = vmatmul.mubr.f32.vlgmr.msra.gmra.mrb[0].mxu0 %v1659_v45  ;;  %v368_v45 = vld [vmem:[#allocation7 + $0x18] sm:$0xff] }
  0x7a   :  { %200 = vmatprep.mubr.f32.mxu0 %v1662_v46  ;;  %v1406_v46 = vpack.c.bf16 %v368_v45, %v366_v44  ;;  %1413 = vmatpush1.bf16.msra.mxu0 %v1412_v9  ;;  %v936_v9 = vrot.slane %v1681_v39, 6 }
  0x7b   :  { %1415 = vmatprep.subr.bf16.mxu0 %v1414_v17  ;;  %v1108_v17 = vld [vmem:[#allocation7 + $0x128] sm:$0xff] }
  0x7c   :  { %v1438_v18 = vpack.c.bf16 %v1108_v17, %v1106_v16 }
  0x7d   :  { %201 = vmatmul.mubr.f32.gmra.mrb[2].mxu0 %v1664_v47  ;;  %v365_v47 = vld [vmem:[#allocation7] sm:$0xff] }
  0x7e   :  { %681 = vmatprep.mubr.f32.mxu0 %v1571_v38  ;;  %v1408_v49 = vpack.c.bf16 %v367_v48, %v365_v47  ;;  %1417 = vmatpush1.bf16.msra.mxu0 %v1416_v21  ;;  %v1440_v21 = vpack.c.bf16 %v1107_v20, %v1105_v19 }
  0x7f   :  { %625 = vmatprep.subr.mxu0 %v612_v29  ;;  %v1116_v29 = vld [vmem:[#allocation7 + $0x168] sm:$0xff] }
  0x82   :  { %626 = vmatpush1.msra.mxu0 %v611_v33  ;;  %v1118_v33 = vld [vmem:[#allocation7 + $0x178] sm:$0xff] }
  0xc2   :  { %v1692_v52 = vpop.permute.xlu0 %211 }
  0xc3   :  { %v449_v47 = vrot.slane %v1692_v52, 2 }
 0x14c   :  { %v196_v40 = vpop.f32.mrb[0].mxu0 }
 0x14d   :  { %446 = vrot.lane.b32.xlu0 %v196_v40, %s1573_s8  ;;  %v198_v41 = vpop.f32.mrb[1].mxu0  ;;  %1303 = vmatpush3.msra.mxu1 %v196_v40 }
 0x14e   :  { %1305 = vmatmul.mubr.msk.f32.vlgmr.msra.gmra.mrb[0].mxu1 %vm214_vm1, %v1681_v39  ;;  %1307 = vmatprep.subr.mxu1 %v1571_v38 }
 0x14f   :  { %1309 = vmatprep.mubr.msk.f32.mxu1 %vm1572_vm0, %v1571_v38 }
 0x150   :  { %v202_v42 = vpop.f32.mrb[2].mxu0 }
 0x151   :  { %767 = vrot.lane.b32.xlu0 %v202_v42, %s1574_s9  ;;  %525 = vrot.lane.b32.xlu1 %v202_v42, %s1573_s8  ;;  %v204_v43 = vpop.f32.mrb[3].mxu0 }
 0x152   :  { %1308 = vmatpush3.msra.mxu1 %v202_v42 }
 0x153   :  { %1310 = vmatmul.mubr.msk.f32.vlgmr.msra.gmra.mrb[2].mxu1 %vm214_vm1, %v1681_v39  ;;  %1407 = vmatprep.subr.bf16.mxu1 %v1406_v46 }
 0x154   :  { %437 = vmatprep.mubr.f32.mxu1 %v1571_v38  ;;  %1409 = vmatpush1.bf16.msra.mxu1 %v1408_v49 }
 0x155   :  { %940 = vrot.lane.b32.xlu0 %v198_v41, %s1575_s2  ;;  %689 = vrot.lane.b32.xlu1 %v196_v40, %s1574_s9  ;;  %v859_v41 = vld [vmem:[#allocation7 + $0xe0] sm:$0xff] }
 0x156   :  { %1312 = vmatprep.subr.mxu1 %v1571_v38 }
 0x159   :  { %938 = vrot.lane.b32.xlu1 %v196_v40, %s1575_s2  ;;  %1022 = vrot.lane.b32.xlu0 %v204_v43, %s1575_s2  ;;  %v857_v40 = vld [vmem:[#allocation7 + $0xd0] sm:$0xff] }
 0x15d   :  { %1020 = vrot.lane.b32.xlu1 %v202_v42, %s1575_s2  ;;  %v1432_v42 = vpack.c.bf16 %v859_v41, %v857_v40  ;;  %v1122_v41 = vld [vmem:[#allocation7 + $0x198] sm:$0xff] }
 0x1bf   :  { %v447_v61 = vpop.permute.xlu0 %446 }
 0x1c3   :  { %v526_v63 = vpop.permute.xlu1 %525  ;;  %v768_v2 = vpop.permute.xlu0 %767 }
 0x1c7   :  { %v690_v0 = vpop.permute.xlu1 %689 }
 0x221   :  { %v284_v50 = vpop.f32.mrb[0].mxu1 }
 0x222   :  { %v1306_v51 = vpop.f32.mrb[1].mxu1  ;;  %v285_v54 = vadd.f32 %v284_v50, %v1692_v52 }
 0x224   :  { %v288_v58 = vmax.f32 %v285_v54, 0.0 }
 0x226   :  { %v355_v53 = vpop.f32.mrb[2].mxu1 }
 0x227   :  { %v356_v55 = vadd.f32 %v355_v53, %v1692_v52  ;;  %v1311_v56 = vpop.f32.mrb[3].mxu1 }
 0x229   :  { %v359_v57 = vmax.f32 %v356_v55, 0.0 }
 0x22b   :  { %v361_v59 = vrot.slane %v359_v57, 6 }
 0x22d   :  { %v364_v60 = vsel %vm363_vm2, %v288_v58, %v361_v59  ;;  %v692_v59 = vrot.slane %v1692_v52, 4 }
 0x22e   :  { %1276 = vmatmul.mubr.msk.f32.vlgmr.msra.gmra.mrb[4].mxu1 %vm369_vm3, %v364_v60 }
 0x22f   :  { %1313 = vmatpush3.msra.mxu1 %v447_v61  ;;  %1314 = vmatprep.mubr.msk.f32.mxu1 %vm1572_vm0, %v1571_v38 }
 0x230   :  { %1317 = vmatprep.subr.mxu1 %v1571_v38 }
 0x232   :  { %1315 = vmatmul.mubr.msk.f32.vlgmr.msra.gmra.mrb[6].mxu1 %vm214_vm1, %v444_v62 }
 0x233   :  { %1318 = vmatpush3.msra.mxu1 %v526_v63  ;;  %1319 = vmatprep.mubr.msk.f32.mxu1 %vm1572_vm0, %v1571_v38 }
 0x234   :  { %1322 = vmatprep.subr.mxu1 %v1571_v38 }
 0x236   :  { %1320 = vmatmul.mubr.msk.f32.vlgmr.msra.gmra.mrb[8].mxu1 %vm214_vm1, %v444_v62 }
 0x237   :  { %1323 = vmatpush3.msra.mxu1 %v690_v0  ;;  %1324 = vmatprep.mubr.msk.f32.mxu1 %vm1572_vm0, %v1571_v38  ;;  %v939_v0 = vpop.permute.xlu1 %938 }
 0x238   :  { %1327 = vmatprep.subr.mxu1 %v1571_v38 }
 0x23a   :  { %1325 = vmatmul.mubr.msk.f32.vlgmr.msra.gmra.mrb[10].mxu1 %vm214_vm1, %v688_v1 }
 0x23b   :  { %1328 = vmatpush3.msra.mxu1 %v768_v2  ;;  %1329 = vmatprep.mubr.msk.f32.mxu1 %vm1572_vm0, %v1571_v38  ;;  %v941_v2 = vpop.permute.xlu0 %940  ;;  %v1021_v10 = vpop.permute.xlu1 %1020 }
 0x23c   :  { %1419 = vmatprep.subr.bf16.mxu1 %v1418_v13  ;;  %v942_v8 = vsel %vm214_vm1, %v939_v0, %v941_v2  ;;  %v1103_v13 = vld [vmem:[#allocation7 + $0x100] sm:$0xff] }
 0x23d   :  { %v1436_v39 = vpack.c.bf16 %v1103_v13, %v1101_v12 }
 0x23e   :  { %1330 = vmatmul.mubr.msk.f32.vlgmr.msra.gmra.mrb[12].mxu1 %vm214_vm1, %v688_v1 }
 0x23f   :  { %929 = vmatprep.mubr.f32.mxu1 %v1571_v38  ;;  %1421 = vmatpush1.bf16.msra.mxu1 %v1420_v14  ;;  %v1023_v14 = vpop.permute.xlu0 %1022 }
 0x240   :  { %1423 = vmatprep.subr.bf16.mxu1 %v1422_v25  ;;  %v1024_v15 = vsel %vm214_vm1, %v1021_v10, %v1023_v14  ;;  %v1442_v25 = vpack.c.bf16 %v1112_v23, %v1110_v22  ;;  %v944_v10 = vrot.slane %v1692_v52, 6 }
 0x243   :  { %1425 = vmatpush1.bf16.msra.mxu1 %v1424_v26  ;;  %v1111_v26 = vld [vmem:[#allocation7 + $0x140] sm:$0xff] }
 0x244   :  { %1427 = vmatprep.subr.bf16.mxu1 %v1426_v30  ;;  %v1444_v27 = vpack.c.bf16 %v1111_v26, %v1109_v24  ;;  %v1446_v30 = vpack.c.bf16 %v1116_v29, %v1114_v28 }
 0x247   :  { %1429 = vmatpush1.bf16.msra.mxu1 %v1428_v34  ;;  %v1120_v34 = vld [vmem:[#allocation7 + $0x188] sm:$0xff] }
 0x248   :  { %1431 = vmatprep.subr.bf16.mxu1 %v1430_v37  ;;  %v1450_v35 = vpack.c.bf16 %v1120_v34, %v1118_v33  ;;  %v1119_v37 = vld [vmem:[#allocation7 + $0x180] sm:$0xff] }
 0x249   :  { %v1452_v40 = vpack.c.bf16 %v1119_v37, %v1117_v36 }
 0x24b   :  { %1433 = vmatpush1.bf16.msra.mxu1 %v1432_v42  ;;  %v1124_v42 = vld [vmem:[#allocation7 + $0x1a8] sm:$0xff] }
 0x24c   :  { %1332 = vmatprep.subr.mxu1 %v1571_v38 }
 0x301   :  { %v1716_v43 = vpop.f32.mrb[4].mxu1 }
 0x302   :  { %v1718_v44 = vpop.f32.mrb[5].mxu1 }
 0x305   :  { %v519_v45 = vpop.f32.mrb[6].mxu1 }
 0x306   :  { %v1316_v46 = vpop.f32.mrb[7].mxu1  ;;  %v520_v49 = vadd.f32 %v519_v45, %v449_v47  ;;  %v1454_v45 = vpack.c.bf16 %v1124_v42, %v1122_v41 }
 0x307   :  { %v1121_v46 = vld [vmem:[#allocation7 + $0x190] sm:$0xff] }
 0x308   :  { %v523_v55 = vmax.f32 %v520_v49, 0.0  ;;  %v1126_v49 = vld [vmem:[#allocation7 + $0x1b8] sm:$0xff] }
 0x309   :  { %v594_v48 = vpop.f32.mrb[8].mxu1 }
 0x30a   :  { %v595_v50 = vadd.f32 %v594_v48, %v449_v47  ;;  %v1321_v51 = vpop.f32.mrb[9].mxu1  ;;  %v1123_v47 = vld [vmem:[#allocation7 + $0x1a0] sm:$0xff] }
 0x30b   :  { %v1456_v48 = vpack.c.bf16 %v1123_v47, %v1121_v46  ;;  %v1236_v51 = vrot.slane %v1716_v43, 2 }
 0x30c   :  { %v598_v53 = vmax.f32 %v595_v50, 0.0  ;;  %v1125_v50 = vld [vmem:[#allocation7 + $0x1b0] sm:$0xff] }
 0x30d   :  { %v762_v54 = vpop.f32.mrb[10].mxu1 }
 0x30e   :  { %v600_v56 = vrot.slane %v598_v53, 6  ;;  %v1326_v57 = vpop.f32.mrb[11].mxu1  ;;  %v763_v61 = vadd.f32 %v762_v54, %v692_v59  ;;  %v1237_v53 = vrot.slane %v1718_v44, 2 }
 0x310   :  { %v602_v58 = vsel %vm363_vm2, %v523_v55, %v600_v56  ;;  %v766_v3 = vmax.f32 %v763_v61, 0.0 }
 0x311   :  { %1279 = vmatmul.mubr.msk.f32.vlgmr.msra.gmra.mrb[4].mxu0 %vm613_vm4, %v602_v58  ;;  %v836_v60 = vpop.f32.mrb[12].mxu1 }
 0x312   :  { %v837_v62 = vadd.f32 %v836_v60, %v692_v59  ;;  %v1331_v63 = vpop.f32.mrb[13].mxu1 }
 0x314   :  { %v840_v1 = vmax.f32 %v837_v62, 0.0 }
 0x316   :  { %v842_v4 = vrot.slane %v840_v1, 6 }
 0x318   :  { %v844_v5 = vsel %vm363_vm2, %v766_v3, %v842_v4 }
 0x319   :  { %1282 = vmatmul.mubr.msk.f32.vlgmr.msra.gmra.mrb[14].mxu1 %vm861_vm5, %v844_v5 }
 0x31a   :  { %1333 = vmatpush3.msra.mxu1 %v942_v8  ;;  %1334 = vmatprep.mubr.msk.f32.mxu1 %vm1572_vm0, %v1571_v38 }
 0x31b   :  { %1337 = vmatprep.subr.mxu1 %v1571_v38 }
 0x31d   :  { %1335 = vmatmul.mubr.msk.f32.vlgmr.msra.gmra.mrb[16].mxu1 %vm214_vm1, %v936_v9 }
 0x31e   :  { %1338 = vmatpush3.msra.mxu1 %v1024_v15  ;;  %1339 = vmatprep.mubr.msk.f32.mxu1 %vm1572_vm0, %v1571_v38 }
 0x31f   :  { %1435 = vmatprep.subr.bf16.mxu1 %v1434_v11 }
 0x321   :  { %1340 = vmatmul.mubr.msk.f32.vlgmr.msra.gmra.mrb[18].mxu1 %vm214_vm1, %v936_v9 }
 0x322   :  { %1437 = vmatpush1.bf16.msra.mxu1 %v1436_v39  ;;  %1195 = vmatprep.mubr.f32.mxu1 %v1571_v38  ;;  %v1113_v38 = vld [vmem:[#allocation7 + $0x150] sm:$0xff] }
 0x323   :  { %1439 = vmatprep.subr.bf16.mxu1 %v1438_v18  ;;  %v1448_v32 = vpack.c.bf16 %v1115_v31, %v1113_v38 }
 0x326   :  { %1441 = vmatpush1.bf16.msra.mxu1 %v1440_v21 }
 0x327   :  { %1443 = vmatprep.subr.bf16.mxu1 %v1442_v25 }
 0x32a   :  { %1445 = vmatpush1.bf16.msra.mxu1 %v1444_v27 }
 0x32b   :  { %1447 = vmatprep.subr.bf16.mxu1 %v1446_v30 }
 0x32e   :  { %1449 = vmatpush1.bf16.msra.mxu1 %v1448_v32 }
 0x32f   :  { %1451 = vmatprep.subr.bf16.mxu1 %v1450_v35 }
 0x332   :  { %1453 = vmatpush1.bf16.msra.mxu1 %v1452_v40 }
 0x333   :  { %1455 = vmatprep.subr.bf16.mxu1 %v1454_v45 }
 0x336   :  { %1457 = vmatpush1.bf16.msra.mxu1 %v1456_v48 }
 0x337   :  { %1155 = vmatprep.subr.mxu1 %v1126_v49 }
 0x33a   :  { %1156 = vmatpush1.msra.mxu1 %v1125_v50 }
 0x3e4   :  { %v683_v54 = vpop.f32.mrb[4].mxu0 }
 0x3e5   :  { %v1206_v55 = vrot.slane %v683_v54, 6  ;;  %v1248_v56 = vsel %vm363_vm2, %v1236_v51, %v683_v54  ;;  %v685_v57 = vpop.f32.mrb[5].mxu0 }
 0x3e6   :  { %v1207_v58 = vrot.slane %v685_v57, 6  ;;  %v1249_v59 = vsel %vm363_vm2, %v1237_v53, %v685_v57 }
 0x3e7   :  { %v1222_v60 = vsel %vm363_vm2, %v1716_v43, %v1206_v55 }
 0x3e8   :  { %v1223_v61 = vsel %vm363_vm2, %v1718_v44, %v1207_v58 }
 0x3ec   :  { %v931_v62 = vpop.f32.mrb[14].mxu1 }
 0x3ed   :  { %v1212_v63 = vrot.slane %v931_v62, 4  ;;  %v1240_v0 = vrot.slane %v931_v62, 6  ;;  %v933_v1 = vpop.f32.mrb[15].mxu1 }
 0x3ee   :  { %v1213_v2 = vrot.slane %v933_v1, 4  ;;  %v1241_v3 = vrot.slane %v933_v1, 6 }
 0x3ef   :  { %v1225_v4 = vsel %vm1224_vm6, %v1222_v60, %v1212_v63  ;;  %v1250_v5 = vsel %vm1224_vm6, %v1248_v56, %v1240_v0 }
 0x3f0   :  { %v1226_v6 = vsel %vm1224_vm6, %v1223_v61, %v1213_v2  ;;  %v1251_v7 = vsel %vm1224_vm6, %v1249_v59, %v1241_v3  ;;  %v1014_v8 = vpop.f32.mrb[16].mxu1 }
 0x3f1   :  { %v1336_v9 = vpop.f32.mrb[17].mxu1  ;;  %v1015_v43 = vadd.f32 %v1014_v8, %v944_v10 }
 0x3f3   :  { %v1018_v14 = vmax.f32 %v1015_v43, 0.0 }
 0x3f4   :  { %v1092_v11 = vpop.f32.mrb[18].mxu1 }
 0x3f5   :  { %v1093_v12 = vadd.f32 %v1092_v11, %v944_v10  ;;  %v1341_v13 = vpop.f32.mrb[19].mxu1 }
 0x3f7   :  { %v1096_v44 = vmax.f32 %v1093_v12, 0.0 }
 0x3f9   :  { %v1098_v15 = vrot.slane %v1096_v44, 6 }
 0x3fb   :  { %v1100_v39 = vsel %vm363_vm2, %v1018_v14, %v1098_v15 }
 0x3fc   :  { %1285 = vmatmul.mubr.msk.f32.vlgmr.msra.gmra.mrb[20].mxu1 %vm1127_vm7, %v1100_v39 }
 0x4cf   :  { %v1197_v16 = vpop.f32.mrb[20].mxu1 }
 0x4d0   :  { %v1218_v17 = vrot.slane %v1197_v16, 2  ;;  %v1244_v18 = vrot.slane %v1197_v16, 4  ;;  %v1199_v19 = vpop.f32.mrb[21].mxu1 }
 0x4d1   :  { %v1219_v20 = vrot.slane %v1199_v19, 2  ;;  %v1245_v52 = vrot.slane %v1199_v19, 4 }
 0x4d2   :  { %v1228_v21 = vsel %vm1227_vm8, %v1225_v4, %v1218_v17  ;;  %v1252_v22 = vsel %vm1227_vm8, %v1250_v5, %v1244_v18 }
 0x4d3   :  { %1230 = vst [vmem:[#allocation8 + $0x10] sm:$0xff] %v1228_v21  ;;  %1254 = vst [vmem:[#allocation8 + $0x30] sm:$0xff] %v1252_v22  ;;  %v1229_v23 = vsel %vm1227_vm8, %v1226_v6, %v1219_v20  ;;  %v1253_v24 = vsel %vm1227_vm8, %v1251_v7, %v1245_v52 }
 0x4d4   :  { %1231 = vst [vmem:[#allocation8 + $0x18] sm:$0xff] %v1229_v23  ;;  %1255 = vst [vmem:[#allocation8 + $0x38] sm:$0xff] %v1253_v24 }
 0x4d5   :  { %1548 = shalt.err (!%p1545_p0)
}
 0x4d6   :  { %s1549_s15 = scalar_lea.hbm %s1765_s5, 1024 }
 0x4d7   :  { %p1550_p1 = scmp.ne.s32.totalorder %s1765_s5, %s1549_s15  ;;  %p1553_p2 = scmp.lt.u32.totalorder %s1549_s15, %s1765_s5 }
 0x4d9   :  { %p1555_p3 = pnand %p1553_p2, %p1550_p1 }
 0x4db   :  { %1558 = shalt.err (!%p1555_p3)
}
 0x4dc   :  { %1267 = dma.vmem_to_hbm [thread:$0]  %s1262_s11, 1024, %s1765_s5, [#allocation4], %s1567_s30, %s1567_s30, %s1568_s6  }
 0x4dd   :  { %1563 = dma.done.wait [#allocation4], 1024  }
 0x4de   :  { %1564 = vsyncadd [#allocation4], 4294966272 }
 0x4df   :  { %1271 = vsyncpa [#allocation3], 1 }
 0x4e0   :  { %1272 = vsyncpa [#allocation6], 1 }
 0x4e1   :  { %1273 = vsyncpa [#allocation4], 1 }

</bundles_post_ra>
